<compile_context>
chip_gen: v7x
topology: tpu7x:2x2x1
jax: 0.10.0
libtpu: 0.0.40
codegen_flags: <defaults>
</compile_context>

<pallas_src>
import math
import numpy as np

import jax
import jax.numpy as jnp
from jax import lax
from jax.experimental import pallas as pl
from jax.experimental.pallas import tpu as pltpu


# ---------------------------------------------------------------------------
# helpers
# ---------------------------------------------------------------------------
def _round_up(x, m):
    return ((x + m - 1) // m) * m


def _tpu_generation():
    """Best-effort TPU generation (5/6/7) or None (non-TPU / unknown)."""
    try:
        d = jax.devices()[0]
        if d.platform != "tpu":
            return None
        kind = d.device_kind.lower()
    except Exception:
        return None
    for tag, gen in (("v7", 7), ("7x", 7), ("v6", 6), ("v5", 5), ("v4", 4)):
        if tag in kind:
            return gen
    return None


def _pick_block_batch(N, K, target_rows, two_cores, vmem_est, budget):
    """Largest divisor Nb of N with Nb*K <= target_rows and VMEM est <= budget.
    On 2-TensorCore chips also keep the grid >= 2 steps when N >= 2."""
    row_cap = max(1, target_rows // max(K, 1))
    if two_cores and N >= 2:
        row_cap = min(row_cap, max(1, N // 2))
    best = 1
    for d in range(1, min(N, row_cap) + 1):
        if N % d == 0 and vmem_est(d) <= budget:
            best = d
    return best


# ---------------------------------------------------------------------------
# kernel factory
# ---------------------------------------------------------------------------
def _make_kernel(Nb, K, Mp, dq_p, dv_p, dim_q, fused, mask_mode, use_bf16,
                 return_weights):
    """mask_mode: 0 = none, 1 = explicit int8 mask ref, 2 = in-kernel causal."""
    inv_scale = 1.0 / math.sqrt(dim_q)          # scale uses the REAL dim_q
    mm_dtype = jnp.bfloat16 if use_bf16 else jnp.float32
    Dtot_p = 2 * dq_p + dv_p

    def kernel(*refs):
        refs = list(refs)
        if fused:
            x_ref = refs.pop(0)
        else:
            xq_ref = refs.pop(0)
            xk_ref = refs.pop(0)
            xv_ref = refs.pop(0)
        mask = refs.pop(0)[...] if mask_mode == 1 else None

        # ---- projections (x @ W + b); padded dims are exact zero columns ----
        if fused:
            w_ref = refs.pop(0)
            b_ref = refs.pop(0)
            x2 = x_ref[...].reshape(Nb * K, Mp)          # view (Mp % 128 == 0)
            qkv = jnp.dot(x2, w_ref[...],
                          preferred_element_type=jnp.float32) + b_ref[...]
            qkv = qkv.reshape(Nb, K, Dtot_p)
            q = qkv[:, :, :dq_p]                         # lane-aligned slices
            k = qkv[:, :, dq_p:2 * dq_p]
            v = qkv[:, :, 2 * dq_p:]
        else:
            wq_ref = refs.pop(0); bq_ref = refs.pop(0)
            wk_ref = refs.pop(0); bk_ref = refs.pop(0)
            wv_ref = refs.pop(0); bv_ref = refs.pop(0)
            xq2 = xq_ref[...].reshape(Nb * K, Mp)
            xk2 = xk_ref[...].reshape(Nb * K, Mp)
            xv2 = xv_ref[...].reshape(Nb * K, Mp)
            q = (jnp.dot(xq2, wq_ref[...], preferred_element_type=jnp.float32)
                 + bq_ref[...]).reshape(Nb, K, dq_p)
            k = (jnp.dot(xk2, wk_ref[...], preferred_element_type=jnp.float32)
                 + bk_ref[...]).reshape(Nb, K, dq_p)
            v = (jnp.dot(xv2, wv_ref[...], preferred_element_type=jnp.float32)
                 + bv_ref[...]).reshape(Nb, K, dv_p)

        # ---- scaled dot-product attention ----
        # scores[b,i,j] = sum_d q[b,i,d] * k[b,j,d]   (no explicit transpose)
        scores = lax.dot_general(
            q.astype(mm_dtype), k.astype(mm_dtype),
            dimension_numbers=(((2,), (2,)), ((0,), (0,))),
            preferred_element_type=jnp.float32) * inv_scale

        if mask_mode == 1:
            scores = jnp.where(mask != 0, -1e9, scores)
        elif mask_mode == 2:
            rows = lax.broadcasted_iota(jnp.int32, (Nb, K, K), 1)
            cols = lax.broadcasted_iota(jnp.int32, (Nb, K, K), 2)
            scores = jnp.where(cols > rows, -1e9, scores)

        # numerically-stable softmax with an EXACT divide (approx reciprocal
        # was not accurate enough for the returned probabilities).
        mx = jnp.max(scores, axis=-1, keepdims=True)
        e = jnp.exp(scores - mx)
        s = jnp.sum(e, axis=-1, keepdims=True)
        p = e * (1.0 / s)

        # y[b,i,d] = sum_j p[b,i,j] * v[b,j,d]
        y = lax.dot_general(
            p.astype(mm_dtype), v.astype(mm_dtype),
            dimension_numbers=(((2,), (1,)), ((0,), (0,))),
            preferred_element_type=jnp.float32)

        if return_weights:
            y_ref, attn_ref = refs
            attn_ref[...] = p.astype(attn_ref.dtype)
        else:
            (y_ref,) = refs
        y_ref[...] = y.astype(y_ref.dtype)

    return kernel


# ---------------------------------------------------------------------------
# wrapper
# ---------------------------------------------------------------------------
def self_attention(query, key, value, wq, bq, wk, bk, wv, bv, mask=None,
                   causal=False, use_bf16_matmul=None, return_weights=True,
                   weights_dtype=jnp.float32):
    """Pallas-backed forward pass matching SelfAttention.forward.

    query/key/value : (N, K, M) float32
    wq, wk          : (M, dim_q)   (transposed PyTorch Linear weights)
    wv              : (M, dim_v)
    bq, bk          : (dim_q,)   bv : (dim_v,)
    mask            : optional bool/int (N, K, K); nonzero => masked (-1e9)
    causal          : build a causal mask in-kernel (used when mask is None)
    returns (y, weights_softmax) with shapes (N, K, dim_v), (N, K, K)
            (weights_softmax is None when return_weights=False)
    """
    N, K, M = query.shape
    dim_q = wq.shape[1]
    dim_v = wv.shape[1]

    gen = _tpu_generation()
    if use_bf16_matmul is None:
        use_bf16_matmul = gen in (6, 7)          # bf16-only fast MXU path
    x_dtype = jnp.bfloat16 if use_bf16_matmul else jnp.float32
    x_bytes = 2 if use_bf16_matmul else 4

    # pad all matmul dims to lane multiples (exact zeros -> results unchanged)
    Mp = _round_up(M, 128)
    dq_p = _round_up(dim_q, 128)
    dv_p = _round_up(dim_v, 128)
    Dtot_p = 2 * dq_p + dv_p

    fused = (query is key) and (key is value)
    mask_mode = 1 if mask is not None else (2 if causal else 0)
    wd_bytes = np.dtype(weights_dtype).itemsize

    def pad_x(x):
        x = x.astype(x_dtype)
        if Mp != M:
            x = jnp.pad(x, ((0, 0), (0, 0), (0, Mp - M)))
        return x

    def pad_wb(w, b, dout_p):
        dout = w.shape[1]
        w = w.astype(x_dtype)
        b = b.astype(jnp.float32)
        if Mp != M or dout_p != dout:
            w = jnp.pad(w, ((0, Mp - M), (0, dout_p - dout)))
            b = jnp.pad(b, ((0, dout_p - dout),))
        return w, b

    wq_p, bq_p = pad_wb(wq, bq, dq_p)
    wk_p, bk_p = pad_wb(wk, bk, dq_p)
    wv_p, bv_p = pad_wb(wv, bv, dv_p)

    # --- chip / VMEM aware block-batch selection -----------------------------
    def vmem_est(nb):
        n_x = 1 if fused else 3
        b = 2 * n_x * nb * K * Mp * x_bytes                       # x blocks
        if mask_mode == 1:
            b += 2 * nb * K * K                                   # int8 mask
        b += 2 * (Mp * Dtot_p * x_bytes + Dtot_p * 4)             # weights
        b += 2 * nb * K * dv_p * 4                                # y blocks
        if return_weights:
            b += 2 * nb * K * K * wd_bytes                        # attn blocks
        # in-body temporaries: qkv, scores/e/p, y
        b += nb * K * Dtot_p * 4 + 3 * nb * K * K * 4 + nb * K * dv_p * 4
        return b

    target_rows = 256 if gen in (6, 7) else 128      # MXU is 2x256^2 on v6/v7
    budget = (44 << 20) if gen == 7 else (88 << 20)  # v7x: 64 MiB physical
    Nb = _pick_block_batch(N, K, target_rows, gen == 7, vmem_est, budget)
    grid = (N // Nb,)
    vmem_limit = int(min((56 << 20) if gen == 7 else (116 << 20),
                         max(32 << 20, int(vmem_est(Nb) * 1.5))))

    per_batch3 = lambda n: (n, 0, 0)
    full_2d = lambda n: (0, 0)

    kernel = _make_kernel(Nb, K, Mp, dq_p, dv_p, dim_q, fused, mask_mode,
                          use_bf16_matmul, return_weights)

    args, in_specs = [], []
    if fused:
        W = jnp.concatenate([wq_p, wk_p, wv_p], axis=1)           # (Mp, Dtot_p)
        B = jnp.concatenate([bq_p, bk_p, bv_p], axis=0).reshape(1, Dtot_p)
        args.append(pad_x(query))
        in_specs.append(pl.BlockSpec((Nb, K, Mp), per_batch3))
        if mask_mode == 1:
            args.append((mask != 0).astype(jnp.int8))
            in_specs.append(pl.BlockSpec((Nb, K, K), per_batch3))
        args += [W, B]
        in_specs += [pl.BlockSpec((Mp, Dtot_p), full_2d),
                     pl.BlockSpec((1, Dtot_p), full_2d)]
    else:
        args += [pad_x(query), pad_x(key), pad_x(value)]
        in_specs += [pl.BlockSpec((Nb, K, Mp), per_batch3)] * 3
        if mask_mode == 1:
            args.append((mask != 0).astype(jnp.int8))
            in_specs.append(pl.BlockSpec((Nb, K, K), per_batch3))
        args += [wq_p, bq_p.reshape(1, dq_p),
                 wk_p, bk_p.reshape(1, dq_p),
                 wv_p, bv_p.reshape(1, dv_p)]
        in_specs += [pl.BlockSpec((Mp, dq_p), full_2d),
                     pl.BlockSpec((1, dq_p), full_2d),
                     pl.BlockSpec((Mp, dq_p), full_2d),
                     pl.BlockSpec((1, dq_p), full_2d),
                     pl.BlockSpec((Mp, dv_p), full_2d),
                     pl.BlockSpec((1, dv_p), full_2d)]

    y_struct = jax.ShapeDtypeStruct((N, K, dv_p), jnp.float32)
    y_spec = pl.BlockSpec((Nb, K, dv_p), per_batch3)
    if return_weights:
        out_shape = (y_struct, jax.ShapeDtypeStruct((N, K, K), weights_dtype))
        out_specs = [y_spec, pl.BlockSpec((Nb, K, K), per_batch3)]
    else:
        out_shape = y_struct
        out_specs = y_spec

    # advisory cost estimate so XLA schedules surrounding ops sensibly
    flops = 2 * N * K * Mp * Dtot_p + 2 * N * K * K * (dq_p + dv_p)
    transcendentals = N * K * K
    bytes_in = sum(int(a.size) * a.dtype.itemsize for a in args)
    bytes_out = N * K * dv_p * 4 + (N * K * K * wd_bytes if return_weights else 0)
    cost = pl.CostEstimate(flops=flops, transcendentals=transcendentals,
                           bytes_accessed=bytes_in + bytes_out)

    res = pl.pallas_call(
        kernel,
        out_shape=out_shape,
        grid_spec=pltpu.PrefetchScalarGridSpec(
            num_scalar_prefetch=0,
            grid=grid,
            in_specs=in_specs,
            out_specs=out_specs,
        ),
        compiler_params=pltpu.CompilerParams(
            dimension_semantics=("parallel",),
            vmem_limit_bytes=vmem_limit),
        cost_estimate=cost,
    )(*args)

    if return_weights:
        y_pad, w = res
    else:
        y_pad, w = res, None
    y = y_pad[..., :dim_v] if dv_p != dim_v else y_pad
    return y, w


# ---------------------------------------------------------------------------
# init + reference
# ---------------------------------------------------------------------------
def init_linear_params(key, dim_in, dim_out):
    """xavier_uniform_ weight + default nn.Linear uniform bias, generated
    directly as (dim_in, dim_out) (pre-transposed)."""
    kw, kb = jax.random.split(key)
    bound_w = math.sqrt(6.0 / (dim_in + dim_out))
    w = jax.random.uniform(kw, (dim_in, dim_out), jnp.float32,
                           minval=-bound_w, maxval=bound_w)
    bound_b = 1.0 / math.sqrt(dim_in)
    b = jax.random.uniform(kb, (dim_out,), jnp.float32,
                           minval=-bound_b, maxval=bound_b)
    return w, b


def reference_self_attention(query, key, value, wq, bq, wk, bk, wv, bv,
                             mask=None):
    """Pure-JAX reference for correctness checking."""
    q = query @ wq + bq
    k = key @ wk + bk
    v = value @ wv + bv
    dq = q.shape[-1]
    scaled = jnp.einsum('nkd,njd->nkj', q, k) / math.sqrt(dq)
    if mask is not None:
        scaled = jnp.where(mask, -1e9, scaled)
    w = jax.nn.softmax(scaled, axis=-1)
    y = jnp.einsum('nkj,njd->nkd', w, v)
    return y, w


# ---------------------------------------------------------------------------
# self-test
# ---------------------------------------------------------------------------
if __name__ == "__main__":
    dim_in, dim_q, dim_v = 32, 32, 32
    K = 8

    root = jax.random.PRNGKey(0)
    k_q, k_k, k_v, k_x, k_wq, k_wk, k_wv = jax.random.split(root, 7)

    wq, bq = init_linear_params(k_wq, dim_in, dim_q)
    wk, bk = init_linear_params(k_wk, dim_in, dim_q)
    wv, bv = init_linear_params(k_wv, dim_in, dim_v)

    # --- case A: distinct q/k/v, no mask, f32 matmuls (strict check) --------
    N_a = 2
    query = jax.random.normal(k_q, (N_a, K, dim_in), jnp.float32)
    key_t = jax.random.normal(k_k, (N_a, K, dim_in), jnp.float32)
    value = jax.random.normal(k_v, (N_a, K, dim_in), jnp.float32)

    y_a, w_a = self_attention(query, key_t, value, wq, bq, wk, bk, wv, bv,
                              use_bf16_matmul=False)
    jax.block_until_ready((y_a, w_a))
    y_ra, w_ra = reference_self_attention(query, key_t, value,
                                          wq, bq, wk, bk, wv, bv)
    assert jnp.allclose(y_a, y_ra, atol=2e-3, rtol=2e-3), "case A: y mismatch"
    assert jnp.allclose(w_a, w_ra, atol=2e-3, rtol=2e-3), "case A: w mismatch"

    # --- case B: query is key is value + explicit mask (fused path, auto) ---
    N_b = 8
    x = jax.random.normal(k_x, (N_b, K, dim_in), jnp.float32)
    causal = jnp.triu(jnp.ones((K, K), dtype=bool), k=1)
    mask = jnp.broadcast_to(causal, (N_b, K, K))

    y_b, w_b = self_attention(x, x, x, wq, bq, wk, bk, wv, bv, mask=mask)
    jax.block_until_ready((y_b, w_b))
    y_rb, w_rb = reference_self_attention(x, x, x, wq, bq, wk, bk, wv, bv,
                                          mask=mask)
    assert jnp.allclose(y_b, y_rb, atol=5e-2, rtol=5e-2), "case B: y mismatch"
    assert jnp.allclose(w_b, w_rb, atol=5e-2, rtol=5e-2), "case B: w mismatch"

    # --- case C: in-kernel causal mask, forced bf16, no weights output ------
    y_c, w_c = self_attention(x, x, x, wq, bq, wk, bk, wv, bv,
                              causal=True, use_bf16_matmul=True,
                              return_weights=False)
    jax.block_until_ready(y_c)
    assert w_c is None
    assert jnp.allclose(y_c, y_rb, atol=5e-2, rtol=5e-2), "case C: y mismatch"

    print("KERNEL_OK")
</pallas_src>

<mosaic_0001>
module attributes {stable_mosaic.version = 11 : i64} {
  func.func @kernel(%arg0: i32, %arg1: memref<2x8x128xf32, #tpu.memory_space<vmem>>, %arg2: memref<2x8x128xf32, #tpu.memory_space<vmem>>, %arg3: memref<2x8x128xf32, #tpu.memory_space<vmem>>, %arg4: memref<128x128xf32, #tpu.memory_space<vmem>>, %arg5: memref<1x128xf32, #tpu.memory_space<vmem>>, %arg6: memref<128x128xf32, #tpu.memory_space<vmem>>, %arg7: memref<1x128xf32, #tpu.memory_space<vmem>>, %arg8: memref<128x128xf32, #tpu.memory_space<vmem>>, %arg9: memref<1x128xf32, #tpu.memory_space<vmem>>, %arg10: memref<2x8x128xf32, #tpu.memory_space<vmem>>, %arg11: memref<2x8x8xf32, #tpu.memory_space<vmem>>) attributes {dimension_semantics = [#tpu.dimension_semantics<parallel>], iteration_bounds = array<i64: 1>, scalar_prefetch = 0 : i64, scratch_operands = 0 : i64, tpu.core_type = #tpu.core_type<tc>, window_params = [{transform_indices = @transform_0, window_bounds = array<i64: 2, 8, 128>}, {transform_indices = @transform_1, window_bounds = array<i64: 2, 8, 128>}, {transform_indices = @transform_2, window_bounds = array<i64: 2, 8, 128>}, {pipeline_mode = #tpu.pipeline_mode<synchronous>, transform_indices = @transform_3, window_bounds = array<i64: 128, 128>}, {pipeline_mode = #tpu.pipeline_mode<synchronous>, transform_indices = @transform_4, window_bounds = array<i64: 1, 128>}, {pipeline_mode = #tpu.pipeline_mode<synchronous>, transform_indices = @transform_5, window_bounds = array<i64: 128, 128>}, {pipeline_mode = #tpu.pipeline_mode<synchronous>, transform_indices = @transform_6, window_bounds = array<i64: 1, 128>}, {pipeline_mode = #tpu.pipeline_mode<synchronous>, transform_indices = @transform_7, window_bounds = array<i64: 128, 128>}, {pipeline_mode = #tpu.pipeline_mode<synchronous>, transform_indices = @transform_8, window_bounds = array<i64: 1, 128>}, {transform_indices = @transform_9, window_bounds = array<i64: 2, 8, 128>}, {transform_indices = @transform_10, window_bounds = array<i64: 2, 8, 8>}]} {
    %c0 = arith.constant 0 : index
    %c0_0 = arith.constant 0 : index
    %c0_1 = arith.constant 0 : index
    %0 = vector.load %arg1[%c0, %c0_0, %c0_1] : memref<2x8x128xf32, #tpu.memory_space<vmem>>, vector<2x8x128xf32>
    %1 = vector.shape_cast %0 : vector<2x8x128xf32> to vector<16x128xf32>
    %c0_2 = arith.constant 0 : index
    %c0_3 = arith.constant 0 : index
    %c0_4 = arith.constant 0 : index
    %2 = vector.load %arg2[%c0_2, %c0_3, %c0_4] : memref<2x8x128xf32, #tpu.memory_space<vmem>>, vector<2x8x128xf32>
    %3 = vector.shape_cast %2 : vector<2x8x128xf32> to vector<16x128xf32>
    %c0_5 = arith.constant 0 : index
    %c0_6 = arith.constant 0 : index
    %c0_7 = arith.constant 0 : index
    %4 = vector.load %arg3[%c0_5, %c0_6, %c0_7] : memref<2x8x128xf32, #tpu.memory_space<vmem>>, vector<2x8x128xf32>
    %5 = vector.shape_cast %4 : vector<2x8x128xf32> to vector<16x128xf32>
    %c0_8 = arith.constant 0 : index
    %c0_9 = arith.constant 0 : index
    %6 = vector.load %arg4[%c0_8, %c0_9] : memref<128x128xf32, #tpu.memory_space<vmem>>, vector<128x128xf32>
    %cst = arith.constant dense<0.000000e+00> : vector<16x128xf32>
    %7 = tpu.matmul %1, %6, %cst {dimension_numbers = #tpu.dot_dimension_numbers<[1], [0], [0], [1], [0, 0, 1, 1], [], []>} : vector<16x128xf32>, vector<128x128xf32>, vector<16x128xf32> -> vector<16x128xf32>
    %c0_10 = arith.constant 0 : index
    %c0_11 = arith.constant 0 : index
    %8 = vector.load %arg5[%c0_10, %c0_11] : memref<1x128xf32, #tpu.memory_space<vmem>>, vector<1x128xf32>
    %9 = vector.broadcast %8 : vector<1x128xf32> to vector<16x128xf32>
    %10 = arith.addf %7, %9 : vector<16x128xf32>
    %11 = vector.shape_cast %10 : vector<16x128xf32> to vector<2x8x128xf32>
    %c0_12 = arith.constant 0 : index
    %c0_13 = arith.constant 0 : index
    %12 = vector.load %arg6[%c0_12, %c0_13] : memref<128x128xf32, #tpu.memory_space<vmem>>, vector<128x128xf32>
    %cst_14 = arith.constant dense<0.000000e+00> : vector<16x128xf32>
    %13 = tpu.matmul %3, %12, %cst_14 {dimension_numbers = #tpu.dot_dimension_numbers<[1], [0], [0], [1], [0, 0, 1, 1], [], []>} : vector<16x128xf32>, vector<128x128xf32>, vector<16x128xf32> -> vector<16x128xf32>
    %c0_15 = arith.constant 0 : index
    %c0_16 = arith.constant 0 : index
    %14 = vector.load %arg7[%c0_15, %c0_16] : memref<1x128xf32, #tpu.memory_space<vmem>>, vector<1x128xf32>
    %15 = vector.broadcast %14 : vector<1x128xf32> to vector<16x128xf32>
    %16 = arith.addf %13, %15 : vector<16x128xf32>
    %17 = vector.shape_cast %16 : vector<16x128xf32> to vector<2x8x128xf32>
    %c0_17 = arith.constant 0 : index
    %c0_18 = arith.constant 0 : index
    %18 = vector.load %arg8[%c0_17, %c0_18] : memref<128x128xf32, #tpu.memory_space<vmem>>, vector<128x128xf32>
    %cst_19 = arith.constant dense<0.000000e+00> : vector<16x128xf32>
    %19 = tpu.matmul %5, %18, %cst_19 {dimension_numbers = #tpu.dot_dimension_numbers<[1], [0], [0], [1], [0, 0, 1, 1], [], []>} : vector<16x128xf32>, vector<128x128xf32>, vector<16x128xf32> -> vector<16x128xf32>
    %c0_20 = arith.constant 0 : index
    %c0_21 = arith.constant 0 : index
    %20 = vector.load %arg9[%c0_20, %c0_21] : memref<1x128xf32, #tpu.memory_space<vmem>>, vector<1x128xf32>
    %21 = vector.broadcast %20 : vector<1x128xf32> to vector<16x128xf32>
    %22 = arith.addf %19, %21 : vector<16x128xf32>
    %23 = vector.shape_cast %22 : vector<16x128xf32> to vector<2x8x128xf32>
    %cst_22 = arith.constant dense<0.000000e+00> : vector<2x8x8xf32>
    %24 = tpu.matmul %11, %17, %cst_22 {dimension_numbers = #tpu.dot_dimension_numbers<[2], [2], [1], [1], [0, 0, 0, 1, 1, 1], [0], [0]>} : vector<2x8x128xf32>, vector<2x8x128xf32>, vector<2x8x8xf32> -> vector<2x8x8xf32>
    %cst_23 = arith.constant 0.176776692 : f32
    %25 = vector.broadcast %cst_23 : f32 to vector<2x8x8xf32>
    %26 = arith.mulf %24, %25 : vector<2x8x8xf32>
    %cst_24 = arith.constant dense<0xFF800000> : vector<2x8xf32>
    %27 = vector.multi_reduction <maximumf>, %26, %cst_24 [2] : vector<2x8x8xf32> to vector<2x8xf32>
    %28 = vector.shape_cast %27 : vector<2x8xf32> to vector<2x8x1xf32>
    %29 = vector.broadcast %28 : vector<2x8x1xf32> to vector<2x8x8xf32>
    %30 = arith.subf %26, %29 : vector<2x8x8xf32>
    %31 = math.exp %30 : vector<2x8x8xf32>
    %cst_25 = arith.constant dense<0.000000e+00> : vector<2x8xf32>
    %32 = vector.multi_reduction <add>, %31, %cst_25 [2] : vector<2x8x8xf32> to vector<2x8xf32>
    %33 = vector.shape_cast %32 : vector<2x8xf32> to vector<2x8x1xf32>
    %cst_26 = arith.constant 1.000000e+00 : f32
    %34 = vector.broadcast %cst_26 : f32 to vector<2x8x1xf32>
    %35 = arith.divf %34, %33 : vector<2x8x1xf32>
    %36 = vector.broadcast %35 : vector<2x8x1xf32> to vector<2x8x8xf32>
    %37 = arith.mulf %31, %36 : vector<2x8x8xf32>
    %cst_27 = arith.constant dense<0.000000e+00> : vector<2x8x128xf32>
    %38 = tpu.matmul %37, %23, %cst_27 {dimension_numbers = #tpu.dot_dimension_numbers<[2], [1], [1], [2], [0, 0, 0, 1, 1, 2], [0], [0]>} : vector<2x8x8xf32>, vector<2x8x128xf32>, vector<2x8x128xf32> -> vector<2x8x128xf32>
    %c0_28 = arith.constant 0 : index
    %c0_29 = arith.constant 0 : index
    %c0_30 = arith.constant 0 : index
    %39 = vector.load %arg11[%c0_28, %c0_29, %c0_30] : memref<2x8x8xf32, #tpu.memory_space<vmem>>, vector<2x8x8xf32>
    tpu.vector_store %arg11[%c0_28, %c0_29, %c0_30], %37 {strides = array<i32>} : memref<2x8x8xf32, #tpu.memory_space<vmem>>, vector<2x8x8xf32>,
    %c0_31 = arith.constant 0 : index
    %c0_32 = arith.constant 0 : index
    %c0_33 = arith.constant 0 : index
    %40 = vector.load %arg10[%c0_31, %c0_32, %c0_33] : memref<2x8x128xf32, #tpu.memory_space<vmem>>, vector<2x8x128xf32>
    tpu.vector_store %arg10[%c0_31, %c0_32, %c0_33], %38 {strides = array<i32>} : memref<2x8x128xf32, #tpu.memory_space<vmem>>, vector<2x8x128xf32>,
    return
  }
  func.func @transform_0(%arg0: i32) -> (i32, i32, i32) {
    %c0_i32 = arith.constant 0 : i32
    %c0_i32_0 = arith.constant 0 : i32
    %c0_i32_1 = arith.constant 0 : i32
    return %arg0, %c0_i32, %c0_i32_0 : i32, i32, i32
  }
  func.func @transform_1(%arg0: i32) -> (i32, i32, i32) {
    %c0_i32 = arith.constant 0 : i32
    %c0_i32_0 = arith.constant 0 : i32
    %c0_i32_1 = arith.constant 0 : i32
    return %arg0, %c0_i32, %c0_i32_0 : i32, i32, i32
  }
  func.func @transform_2(%arg0: i32) -> (i32, i32, i32) {
    %c0_i32 = arith.constant 0 : i32
    %c0_i32_0 = arith.constant 0 : i32
    %c0_i32_1 = arith.constant 0 : i32
    return %arg0, %c0_i32, %c0_i32_0 : i32, i32, i32
  }
  func.func @transform_3(%arg0: i32) -> (i32, i32) {
    %c0_i32 = arith.constant 0 : i32
    %c0_i32_0 = arith.constant 0 : i32
    %c0_i32_1 = arith.constant 0 : i32
    return %c0_i32, %c0_i32_0 : i32, i32
  }
  func.func @transform_4(%arg0: i32) -> (i32, i32) {
    %c0_i32 = arith.constant 0 : i32
    %c0_i32_0 = arith.constant 0 : i32
    %c0_i32_1 = arith.constant 0 : i32
    return %c0_i32, %c0_i32_0 : i32, i32
  }
  func.func @transform_5(%arg0: i32) -> (i32, i32) {
    %c0_i32 = arith.constant 0 : i32
    %c0_i32_0 = arith.constant 0 : i32
    %c0_i32_1 = arith.constant 0 : i32
    return %c0_i32, %c0_i32_0 : i32, i32
  }
  func.func @transform_6(%arg0: i32) -> (i32, i32) {
    %c0_i32 = arith.constant 0 : i32
    %c0_i32_0 = arith.constant 0 : i32
    %c0_i32_1 = arith.constant 0 : i32
    return %c0_i32, %c0_i32_0 : i32, i32
  }
  func.func @transform_7(%arg0: i32) -> (i32, i32) {
    %c0_i32 = arith.constant 0 : i32
    %c0_i32_0 = arith.constant 0 : i32
    %c0_i32_1 = arith.constant 0 : i32
    return %c0_i32, %c0_i32_0 : i32, i32
  }
  func.func @transform_8(%arg0: i32) -> (i32, i32) {
    %c0_i32 = arith.constant 0 : i32
    %c0_i32_0 = arith.constant 0 : i32
    %c0_i32_1 = arith.constant 0 : i32
    return %c0_i32, %c0_i32_0 : i32, i32
  }
  func.func @transform_9(%arg0: i32) -> (i32, i32, i32) {
    %c0_i32 = arith.constant 0 : i32
    %c0_i32_0 = arith.constant 0 : i32
    %c0_i32_1 = arith.constant 0 : i32
    return %arg0, %c0_i32, %c0_i32_0 : i32, i32, i32
  }
  func.func @transform_10(%arg0: i32) -> (i32, i32, i32) {
    %c0_i32 = arith.constant 0 : i32
    %c0_i32_0 = arith.constant 0 : i32
    %c0_i32_1 = arith.constant 0 : i32
    return %arg0, %c0_i32, %c0_i32_0 : i32, i32, i32
  }
}

</mosaic_0001>

<bundles_post_ra>
// kernel: tpu_custom_call.1
= control target key start
LH: loop header
LB: loop body
LE: loop exit
PB: predicated region body
PF: predicated region fallthrough
CT: control target
= control target key end

     0   :  { %16 = vsyncpa [#allocation3], 0  ;;  %s1504_s0 = inlined_call_operand.hbm [shape: f32[2,8,128], index: 0, kind: input, shape index: {}]   ;;  %s1505_s1 = inlined_call_operand.hbm [shape: f32[2,8,128], index: 1, kind: input, shape index: {}]   ;;  %s1506_s2 = inlined_call_operand.hbm [shape: f32[2,8,128], index: 2, kind: input, shape index: {}]   ;;  %s1507_s3 = inlined_call_operand.hbm [shape: f32[128,128], index: 3, kind: input, shape index: {}]   ;;  %s1508_s4 = inlined_call_operand.vmem [shape: f32[1,128], index: 4, kind: input, shape index: {}]   ;;  %s1509_s5 = inlined_call_operand.hbm [shape: f32[128,128], index: 5, kind: input, shape index: {}]   ;;  %s1510_s6 = inlined_call_operand.vmem [shape: f32[1,128], index: 6, kind: input, shape index: {}]   ;;  %s1511_s7 = inlined_call_operand.hbm [shape: f32[128,128], index: 7, kind: input, shape index: {}]   ;;  %s1512_s8 = inlined_call_operand.vmem [shape: f32[1,128], index: 8, kind: input, shape index: {}]   ;;  %s1513_s9 = inlined_call_operand.hbm [shape: f32[2,8,128], index: 9, kind: output, shape index: {0}]   ;;  %s1514_s10 = inlined_call_operand.hbm [shape: f32[2,8,8], index: 10, kind: output, shape index: {1}]  }
   0x1   :  { %17 = vsyncpa [#allocation6], 0 }
   0x2   :  { %18 = vsyncpa [#allocation9], 0 }
   0x3   :  { %19 = vsyncpa [#allocation12], 0 }
   0x4   :  { %20 = vsyncpa [#allocation4], 0 }
   0x5   :  { %21 = vsyncpa [#allocation15], 0  ;;  %s1267_s13 = smov [#allocation5]   ;;  %s1268_s15 = smov [#allocation8]  }
   0x6   :  { %s39_s14 = sshll.u32 %s1267_s13, 4  ;;  %s63_s16 = sshll.u32 %s1268_s15, 4  ;;  %s40_s14 = int_to_ptr.vmem [resolvable:$true] %s39_s14  ;;  %s1334_s16 = int_to_ptr.vmem [resolvable:$true] %s63_s16 }
   0x7   :  { %s1079_s19 = scalar_lea.hbm %s1505_s1, 256 }
   0x8   :  { %p1080_p0 = scmp.ne.s32.totalorder %s1505_s1, %s1079_s19  ;;  %p1083_p1 = scmp.lt.u32.totalorder %s1079_s19, %s1505_s1 }
   0xa   :  { %p1085_p2 = pnand %p1083_p1, %p1080_p0 }
   0xc   :  { %1088 = shalt.err (!%p1085_p2)
}
   0xd   :  { %s1089_s24 = scalar_lea.vmem %s40_s14, 256  ;;  %p1094_p4 = scmp.lt.s32.totalorder %s40_s14, %s40_s14 }
   0xe   :  { %p1090_p3 = scmp.ne.s32.totalorder %s40_s14, %s1089_s24  ;;  %p1095_p5 = scmp.lt.s32.totalorder %s1089_s24, %s1089_s24 }
  0x10   :  { %p1096_p6 = por %p1095_p5, %p1094_p4 }
  0x12   :  { %p1097_p7 = pnand %p1096_p6, %p1090_p3 }
  0x14   :  { %1100 = shalt.err (!%p1097_p7)
}
  0x15   :  { %s1269_s25 = smov 128   ;;  %s1270_s26 = smov 8  }
  0x16   :  { %45 = dma.hbm_to_vmem [thread:$0]  %s1505_s1, 256, %s40_s14, [#allocation6], %s1269_s25, %s1269_s25, %s1270_s26  }
  0x17   :  { %s1101_s11 = scalar_lea.hbm %s1507_s3, 2048 }
  0x18   :  { %p1102_p8 = scmp.ne.s32.totalorder %s1507_s3, %s1101_s11  ;;  %p1105_p9 = scmp.lt.u32.totalorder %s1101_s11, %s1507_s3 }
  0x1a   :  { %p1107_p10 = pnand %p1105_p9, %p1102_p8 }
  0x1c   :  { %1110 = shalt.err (!%p1107_p10)
}
  0x1d   :  { %s1111_s18 = scalar_lea.vmem %s1334_s16, 2048  ;;  %p1116_p12 = scmp.lt.s32.totalorder %s1334_s16, %s1334_s16 }
  0x1e   :  { %p1112_p11 = scmp.ne.s32.totalorder %s1334_s16, %s1111_s18  ;;  %p1117_p13 = scmp.lt.s32.totalorder %s1111_s18, %s1111_s18 }
  0x20   :  { %p1118_p0 = por %p1117_p13, %p1116_p12 }
  0x22   :  { %p1119_p1 = pnand %p1118_p0, %p1112_p11 }
  0x24   :  { %1122 = shalt.err (!%p1119_p1)
}
  0x25   :  { %69 = dma.hbm_to_vmem [thread:$0]  %s1507_s3, 2048, %s1334_s16, [#allocation9], %s1269_s25, %s1269_s25, %s1270_s26  }
  0x26   :  { %s1271_s19 = smov [#allocation2]   ;;  %s1272_s21 = smov [#allocation7]  }
  0x27   :  { %s27_s20 = sshll.u32 %s1271_s19, 4  ;;  %s51_s22 = sshll.u32 %s1272_s21, 4  ;;  %s28_s20 = int_to_ptr.vmem [resolvable:$true] %s27_s20  ;;  %s1371_s22 = int_to_ptr.vmem [resolvable:$true] %s51_s22 }
  0x28   :  { %s1123_s27 = scalar_lea.hbm %s1504_s0, 256 }
  0x29   :  { %p1124_p2 = scmp.ne.s32.totalorder %s1504_s0, %s1123_s27  ;;  %p1127_p3 = scmp.lt.u32.totalorder %s1123_s27, %s1504_s0 }
  0x2b   :  { %p1129_p4 = pnand %p1127_p3, %p1124_p2 }
  0x2d   :  { %1132 = shalt.err (!%p1129_p4)
}
  0x2e   :  { %s1133_s3 = scalar_lea.vmem %s28_s20, 256  ;;  %p1138_p6 = scmp.lt.s32.totalorder %s28_s20, %s28_s20 }
  0x2f   :  { %p1134_p5 = scmp.ne.s32.totalorder %s28_s20, %s1133_s3  ;;  %p1139_p7 = scmp.lt.s32.totalorder %s1133_s3, %s1133_s3 }
  0x31   :  { %p1140_p8 = por %p1139_p7, %p1138_p6 }
  0x33   :  { %p1141_p9 = pnand %p1140_p8, %p1134_p5 }
  0x35   :  { %1144 = shalt.err (!%p1141_p9)
}
  0x36   :  { %33 = dma.hbm_to_vmem [thread:$0]  %s1504_s0, 256, %s28_s20, [#allocation3], %s1269_s25, %s1269_s25, %s1270_s26  }
  0x37   :  { %s1145_s17 = scalar_lea.hbm %s1506_s2, 256 }
  0x38   :  { %p1146_p10 = scmp.ne.s32.totalorder %s1506_s2, %s1145_s17  ;;  %p1149_p11 = scmp.lt.u32.totalorder %s1145_s17, %s1506_s2 }
  0x3a   :  { %p1151_p12 = pnand %p1149_p11, %p1146_p10 }
  0x3c   :  { %1154 = shalt.err (!%p1151_p12)
}
  0x3d   :  { %s1155_s21 = scalar_lea.vmem %s1371_s22, 256  ;;  %p1160_p0 = scmp.lt.s32.totalorder %s1371_s22, %s1371_s22 }
  0x3e   :  { %p1156_p13 = scmp.ne.s32.totalorder %s1371_s22, %s1155_s21  ;;  %p1161_p1 = scmp.lt.s32.totalorder %s1155_s21, %s1155_s21 }
  0x40   :  { %p1162_p2 = por %p1161_p1, %p1160_p0 }
  0x42   :  { %p1163_p3 = pnand %p1162_p2, %p1156_p13 }
  0x44   :  { %1166 = shalt.err (!%p1163_p3)
}
  0x45   :  { %57 = dma.hbm_to_vmem [thread:$0]  %s1506_s2, 256, %s1371_s22, [#allocation6], %s1269_s25, %s1269_s25, %s1270_s26  }
  0x46   :  { %s1273_s23 = smov [#allocation10]   ;;  %s1274_s27 = smov [#allocation11]  }
  0x47   :  { %s77_s24 = sshll.u32 %s1273_s23, 4  ;;  %s91_s28 = sshll.u32 %s1274_s27, 4  ;;  %s78_s24 = int_to_ptr.vmem [resolvable:$true] %s77_s24  ;;  %s1408_s28 = int_to_ptr.vmem [resolvable:$true] %s91_s28 }
  0x48   :  { %s1167_s11 = scalar_lea.hbm %s1509_s5, 2048 }
  0x49   :  { %p1168_p4 = scmp.ne.s32.totalorder %s1509_s5, %s1167_s11  ;;  %p1171_p5 = scmp.lt.u32.totalorder %s1167_s11, %s1509_s5 }
  0x4b   :  { %p1173_p6 = pnand %p1171_p5, %p1168_p4 }
  0x4d   :  { %1176 = shalt.err (!%p1173_p6)
}
  0x4e   :  { %s1177_s2 = scalar_lea.vmem %s78_s24, 2048  ;;  %p1182_p8 = scmp.lt.s32.totalorder %s78_s24, %s78_s24 }
  0x4f   :  { %p1178_p7 = scmp.ne.s32.totalorder %s78_s24, %s1177_s2  ;;  %p1183_p9 = scmp.lt.s32.totalorder %s1177_s2, %s1177_s2 }
  0x51   :  { %p1184_p10 = por %p1183_p9, %p1182_p8 }
  0x53   :  { %p1185_p11 = pnand %p1184_p10, %p1178_p7 }
  0x55   :  { %1188 = shalt.err (!%p1185_p11)
}
  0x56   :  { %83 = dma.hbm_to_vmem [thread:$0]  %s1509_s5, 2048, %s78_s24, [#allocation9], %s1269_s25, %s1269_s25, %s1270_s26  }
  0x57   :  { %s1189_s1 = scalar_lea.hbm %s1511_s7, 2048 }
  0x58   :  { %p1190_p12 = scmp.ne.s32.totalorder %s1511_s7, %s1189_s1  ;;  %p1193_p13 = scmp.lt.u32.totalorder %s1189_s1, %s1511_s7 }
  0x5a   :  { %p1195_p0 = pnand %p1193_p13, %p1190_p12 }
  0x5c   :  { %1198 = shalt.err (!%p1195_p0)
}
  0x5d   :  { %s1199_s20 = scalar_lea.vmem %s1408_s28, 2048  ;;  %p1204_p2 = scmp.lt.s32.totalorder %s1408_s28, %s1408_s28 }
  0x5e   :  { %p1200_p1 = scmp.ne.s32.totalorder %s1408_s28, %s1199_s20  ;;  %p1205_p3 = scmp.lt.s32.totalorder %s1199_s20, %s1199_s20 }
  0x60   :  { %p1206_p4 = por %p1205_p3, %p1204_p2 }
  0x62   :  { %p1207_p5 = pnand %p1206_p4, %p1200_p1 }
  0x64   :  { %1210 = shalt.err (!%p1207_p5)
}
  0x65   :  { %97 = dma.hbm_to_vmem [thread:$0]  %s1511_s7, 2048, %s1408_s28, [#allocation12], %s1269_s25, %s1269_s25, %s1270_s26  }
  0x66   :  { %1255 = dma.done.wait [#allocation3], 256  }
  0x67   :  { %1256 = vsyncadd [#allocation3], 4294967040 }
  0x68   :  { %1257 = dma.done.wait [#allocation6], 512  }
  0x69   :  { %1258 = vsyncadd [#allocation6], 4294966784 }
  0x6a   :  { %1259 = dma.done.wait [#allocation9], 4096  }
  0x6b   :  { %1260 = vsyncadd [#allocation9], 4294963200 }
  0x6c   :  { %1261 = dma.done.wait [#allocation12], 2048  }
  0x6d   :  { %1262 = vsyncadd [#allocation12], 4294965248  ;;  %v222_v0 = vld [vmem:[#allocation10] sm:$0xff]  ;;  %v223_v1 = vld [vmem:[#allocation10 + $0x8] sm:$0xff]  ;;  %v1275_v52 = vmov 0.0   ;;  %vm1276_vm0 = vmmov 0  }
  0x6e   :  { %v124_v2 = vld [vmem:[#allocation8] sm:$0xff]  ;;  %v995_v3 = vpack.c.bf16 %v223_v1, %v222_v0  ;;  %v125_v4 = vld [vmem:[#allocation8 + $0x8] sm:$0xff]  ;;  %v224_v5 = vld [vmem:[#allocation10 + $0x10] sm:$0xff]  ;;  %vm560_vm1 = vcmask 64512  }
  0x6f   :  { %v225_v6 = vld [vmem:[#allocation10 + $0x18] sm:$0xff]  ;;  %v963_v7 = vpack.c.bf16 %v125_v4, %v124_v2  ;;  %v126_v9 = vld [vmem:[#allocation8 + $0x10] sm:$0xff]  ;;  %v226_v11 = vld [vmem:[#allocation10 + $0x20] sm:$0xff] }
  0x70   :  { %v999_v8 = vpack.c.bf16 %v225_v6, %v224_v5  ;;  %v127_v10 = vld [vmem:[#allocation8 + $0x18] sm:$0xff]  ;;  %996 = vmatprep.subr.bf16.mxu1 %v995_v3  ;;  %v227_v13 = vld [vmem:[#allocation10 + $0x28] sm:$0xff]  ;;  %v128_v14 = vld [vmem:[#allocation8 + $0x20] sm:$0xff] }
  0x71   :  { %v967_v12 = vpack.c.bf16 %v127_v10, %v126_v9  ;;  %v129_v15 = vld [vmem:[#allocation8 + $0x28] sm:$0xff]  ;;  %998 = vmatpush3.bf16.msra.mxu1 %v995_v3  ;;  %964 = vmatprep.subr.bf16.mxu0 %v963_v7  ;;  %v1003_v16 = vpack.c.bf16 %v227_v13, %v226_v11  ;;  %v228_v18 = vld [vmem:[#allocation10 + $0x30] sm:$0xff]  ;;  %v229_v19 = vld [vmem:[#allocation10 + $0x38] sm:$0xff] }
  0x72   :  { %966 = vmatpush3.bf16.msra.mxu0 %v963_v7  ;;  %1000 = vmatprep.subr.bf16.mxu1 %v999_v8  ;;  %v971_v17 = vpack.c.bf16 %v129_v15, %v128_v14  ;;  %v130_v20 = vld [vmem:[#allocation8 + $0x30] sm:$0xff]  ;;  %v131_v21 = vld [vmem:[#allocation8 + $0x38] sm:$0xff]  ;;  %v1007_v22 = vpack.c.bf16 %v229_v19, %v228_v18  ;;  %v230_v24 = vld [vmem:[#allocation10 + $0x40] sm:$0xff] }
  0x73   :  { %968 = vmatprep.subr.bf16.mxu0 %v967_v12  ;;  %v975_v23 = vpack.c.bf16 %v131_v21, %v130_v20  ;;  %v231_v25 = vld [vmem:[#allocation10 + $0x48] sm:$0xff]  ;;  %v120_v26 = vld [vmem:[#allocation5] sm:$0xff]  ;;  %v118_v29 = vld [vmem:[#allocation2] sm:$0xff] }
  0x74   :  { %v132_v27 = vld [vmem:[#allocation8 + $0x40] sm:$0xff]  ;;  %v133_v28 = vld [vmem:[#allocation8 + $0x48] sm:$0xff]  ;;  %905 = vmatprep.mubr.f32.mxu1 %v120_v26  ;;  %870 = vmatprep.mubr.f32.mxu0 %v118_v29  ;;  %v1011_v30 = vpack.c.bf16 %v231_v25, %v230_v24  ;;  %v232_v32 = vld [vmem:[#allocation10 + $0x50] sm:$0xff] }
  0x75   :  { %1002 = vmatpush3.bf16.msra.mxu1 %v999_v8  ;;  %v979_v31 = vpack.c.bf16 %v133_v28, %v132_v27  ;;  %v233_v33 = vld [vmem:[#allocation10 + $0x58] sm:$0xff]  ;;  %v134_v34 = vld [vmem:[#allocation8 + $0x50] sm:$0xff]  ;;  %v234_v38 = vld [vmem:[#allocation10 + $0x60] sm:$0xff] }
  0x76   :  { %970 = vmatpush3.bf16.msra.mxu0 %v967_v12  ;;  %1004 = vmatprep.subr.bf16.mxu1 %v1003_v16  ;;  %v135_v35 = vld [vmem:[#allocation8 + $0x58] sm:$0xff]  ;;  %v1015_v36 = vpack.c.bf16 %v233_v33, %v232_v32  ;;  %v235_v39 = vld [vmem:[#allocation10 + $0x68] sm:$0xff]  ;;  %v136_v40 = vld [vmem:[#allocation8 + $0x60] sm:$0xff] }
  0x77   :  { %972 = vmatprep.subr.bf16.mxu0 %v971_v17  ;;  %v983_v37 = vpack.c.bf16 %v135_v35, %v134_v34  ;;  %v137_v41 = vld [vmem:[#allocation8 + $0x68] sm:$0xff]  ;;  %v1019_v42 = vpack.c.bf16 %v235_v39, %v234_v38  ;;  %v236_v44 = vld [vmem:[#allocation10 + $0x70] sm:$0xff]  ;;  %v237_v45 = vld [vmem:[#allocation10 + $0x78] sm:$0xff] }
  0x78   :  { %v987_v43 = vpack.c.bf16 %v137_v41, %v136_v40  ;;  %v138_v46 = vld [vmem:[#allocation8 + $0x70] sm:$0xff]  ;;  %v139_v47 = vld [vmem:[#allocation8 + $0x78] sm:$0xff]  ;;  %v1023_v48 = vpack.c.bf16 %v237_v45, %v236_v44  ;;  %v121_v50 = vld [vmem:[#allocation5 + $0x8] sm:$0xff] }
  0x79   :  { %1006 = vmatpush3.bf16.msra.mxu1 %v1003_v16  ;;  %v991_v49 = vpack.c.bf16 %v139_v47, %v138_v46  ;;  %v119_v51 = vld [vmem:[#allocation2 + $0x8] sm:$0xff]  ;;  %v772_v53 = vld [vmem:[%s1510_s6] ss:$0 sm:$0xff]  ;;  %v320_v63 = vld [vmem:[#allocation11] sm:$0xff] }
  0x7a   :  { %974 = vmatpush3.bf16.msra.mxu0 %v971_v17  ;;  %1008 = vmatprep.subr.bf16.mxu1 %v1007_v22  ;;  %v771_v55 = vld [vmem:[%s1508_s4] ss:$0 sm:$0xff]  ;;  %v321_v0 = vld [vmem:[#allocation11 + $0x8] sm:$0xff]  ;;  %v323_v3 = vld [vmem:[#allocation11 + $0x18] sm:$0xff] }
  0x7b   :  { %976 = vmatprep.subr.bf16.mxu0 %v975_v23  ;;  %v322_v1 = vld [vmem:[#allocation11 + $0x10] sm:$0xff]  ;;  %v1027_v2 = vpack.c.bf16 %v321_v0, %v320_v63  ;;  %v324_v5 = vld [vmem:[#allocation11 + $0x20] sm:$0xff]  ;;  %v325_v6 = vld [vmem:[#allocation11 + $0x28] sm:$0xff] }
  0x7c   :  { %v1031_v4 = vpack.c.bf16 %v323_v3, %v322_v1  ;;  %v1035_v7 = vpack.c.bf16 %v325_v6, %v324_v5  ;;  %v122_v8 = vld [vmem:[#allocation7] sm:$0xff]  ;;  %v327_v10 = vld [vmem:[#allocation11 + $0x38] sm:$0xff]  ;;  %v328_v12 = vld [vmem:[#allocation11 + $0x40] sm:$0xff] }
  0x7d   :  { %1010 = vmatpush3.bf16.msra.mxu1 %v1007_v22  ;;  %v326_v9 = vld [vmem:[#allocation11 + $0x30] sm:$0xff]  ;;  %v329_v13 = vld [vmem:[#allocation11 + $0x48] sm:$0xff]  ;;  %v331_v16 = vld [vmem:[#allocation11 + $0x58] sm:$0xff] }
  0x7e   :  { %978 = vmatpush3.bf16.msra.mxu0 %v975_v23  ;;  %1012 = vmatprep.subr.bf16.mxu1 %v1011_v30  ;;  %v1039_v11 = vpack.c.bf16 %v327_v10, %v326_v9  ;;  %v1043_v14 = vpack.c.bf16 %v329_v13, %v328_v12  ;;  %v330_v15 = vld [vmem:[#allocation11 + $0x50] sm:$0xff]  ;;  %v332_v18 = vld [vmem:[#allocation11 + $0x60] sm:$0xff]  ;;  %v333_v19 = vld [vmem:[#allocation11 + $0x68] sm:$0xff] }
  0x7f   :  { %980 = vmatprep.subr.bf16.mxu0 %v979_v31  ;;  %v1047_v17 = vpack.c.bf16 %v331_v16, %v330_v15  ;;  %v1051_v20 = vpack.c.bf16 %v333_v19, %v332_v18  ;;  %v334_v21 = vld [vmem:[#allocation11 + $0x70] sm:$0xff]  ;;  %v335_v22 = vld [vmem:[#allocation11 + $0x78] sm:$0xff] }
  0x80   :  { %v1055_v23 = vpack.c.bf16 %v335_v22, %v334_v21  ;;  %v123_v24 = vld [vmem:[#allocation7 + $0x8] sm:$0xff]  ;;  %v773_v44 = vld [vmem:[%s1512_s8] ss:$0 sm:$0xff]  ;;  %s1277_s8 = smov [#allocation14]  }
  0x81   :  { %1014 = vmatpush3.bf16.msra.mxu1 %v1011_v30  ;;  %s752_s29 = sshll.u32 %s1277_s8, 4  ;;  %s753_s29 = int_to_ptr.vmem [resolvable:$true] %s752_s29 }
  0x82   :  { %982 = vmatpush3.bf16.msra.mxu0 %v979_v31  ;;  %1016 = vmatprep.subr.bf16.mxu1 %v1015_v36  ;;  %s1211_s30 = scalar_lea.vmem %s753_s29, 256  ;;  %p1216_p7 = scmp.lt.s32.totalorder %s753_s29, %s753_s29 }
  0x83   :  { %984 = vmatprep.subr.bf16.mxu0 %v983_v37  ;;  %p1212_p6 = scmp.ne.s32.totalorder %s753_s29, %s1211_s30  ;;  %p1217_p8 = scmp.lt.s32.totalorder %s1211_s30, %s1211_s30 }
  0x85   :  { %1018 = vmatpush3.bf16.msra.mxu1 %v1015_v36  ;;  %p1218_p9 = por %p1217_p8, %p1216_p7 }
  0x86   :  { %986 = vmatpush3.bf16.msra.mxu0 %v983_v37  ;;  %1020 = vmatprep.subr.bf16.mxu1 %v1019_v42 }
  0x87   :  { %988 = vmatprep.subr.bf16.mxu0 %v987_v43  ;;  %p1219_p10 = pnand %p1218_p9, %p1212_p6 }
  0x89   :  { %1022 = vmatpush3.bf16.msra.mxu1 %v1019_v42 }
  0x8a   :  { %990 = vmatpush3.bf16.msra.mxu0 %v987_v43  ;;  %1024 = vmatprep.subr.bf16.mxu1 %v1023_v48 }
  0x8b   :  { %992 = vmatprep.subr.bf16.mxu0 %v991_v49 }
  0x8d   :  { %1026 = vmatpush3.bf16.msra.mxu1 %v1023_v48 }
  0x8e   :  { %994 = vmatpush3.bf16.msra.mxu0 %v991_v49  ;;  %943 = vmatprep.subr.mxu1 %v1275_v52 }
  0x8f   :  { %1028 = vmatprep.subr.bf16.mxu0 %v1027_v2 }
  0x90   :  { %906 = vmatmul.mubr.f32.vlgmr.msra.gmra.mrb[0].mxu1 %v121_v50 }
  0x91   :  { %871 = vmatmul.mubr.f32.vlgmr.msra.gmra.mrb[0].mxu0 %v119_v51  ;;  %945 = vmatprep.mubr.msk.f32.mxu1 %vm1276_vm0, %v1275_v52 }
  0x92   :  { %1030 = vmatpush3.bf16.msra.mxu0 %v1027_v2  ;;  %940 = vmatprep.mubr.f32.mxu0 %v122_v8 }
  0x93   :  { %1032 = vmatprep.subr.bf16.mxu0 %v1031_v4 }
  0x96   :  { %1034 = vmatpush3.bf16.msra.mxu0 %v1031_v4 }
  0x97   :  { %1036 = vmatprep.subr.bf16.mxu0 %v1035_v7 }
  0x9a   :  { %1038 = vmatpush3.bf16.msra.mxu0 %v1035_v7 }
  0x9b   :  { %1040 = vmatprep.subr.bf16.mxu0 %v1039_v11 }
  0x9e   :  { %1042 = vmatpush3.bf16.msra.mxu0 %v1039_v11 }
  0x9f   :  { %1044 = vmatprep.subr.bf16.mxu0 %v1043_v14 }
  0xa2   :  { %1046 = vmatpush3.bf16.msra.mxu0 %v1043_v14 }
  0xa3   :  { %1048 = vmatprep.subr.bf16.mxu0 %v1047_v17 }
  0xa6   :  { %1050 = vmatpush3.bf16.msra.mxu0 %v1047_v17 }
  0xa7   :  { %1052 = vmatprep.subr.bf16.mxu0 %v1051_v20 }
  0xaa   :  { %1054 = vmatpush3.bf16.msra.mxu0 %v1051_v20 }
  0xab   :  { %1056 = vmatprep.subr.bf16.mxu0 %v1055_v23 }
  0xae   :  { %1058 = vmatpush3.bf16.msra.mxu0 %v1055_v23 }
  0xb1   :  { %941 = vmatmul.mubr.f32.vlgmr.msra.gmra.mrb[2].mxu0 %v123_v24 }
 0x163   :  { %v907_v54 = vpop.f32.mrb[0].mxu1 }
 0x164   :  { %v311_v56 = vpop.f32.mrb[1].mxu1  ;;  %v872_v57 = vpop.f32.mrb[0].mxu0  ;;  %v317_v61 = vadd.f32 %v907_v54, %v772_v53 }
 0x165   :  { %v312_v58 = vadd.f32 %v772_v53, %v311_v56  ;;  %v213_v59 = vpop.f32.mrb[1].mxu0  ;;  %v219_v62 = vadd.f32 %v872_v57, %v771_v55 }
 0x166   :  { %v214_v60 = vadd.f32 %v771_v55, %v213_v59 }
 0x167   :  { %944 = vmatpush3.xpose.msra.mxu1 %v312_v58 }
 0x168   :  { %948 = vmatprep.subr.mxu1 %v1275_v52 }
 0x16a   :  { %946 = vmatmul.mubr.f32.vlgmr.msra.gmra.mrb[2].mxu1 %v214_v60 }
 0x16b   :  { %949 = vmatpush3.xpose.msra.mxu1 %v317_v61  ;;  %950 = vmatprep.mubr.msk.f32.mxu1 %vm1276_vm0, %v1275_v52 }
 0x16c   :  { %953 = vmatprep.subr.mxu1 %v1275_v52 }
 0x16e   :  { %951 = vmatmul.mubr.f32.vlgmr.msra.gmra.mrb[4].mxu1 %v219_v62 }
 0x16f   :  { %955 = vmatprep.mubr.msk.f32.mxu1 %vm1276_vm0, %v1275_v52 }
 0x184   :  { %v942_v43 = vpop.f32.mrb[2].mxu0 }
 0x185   :  { %v409_v45 = vpop.f32.mrb[3].mxu0  ;;  %v415_v46 = vadd.f32 %v942_v43, %v773_v44 }
 0x186   :  { %v410_v47 = vadd.f32 %v773_v44, %v409_v45 }
 0x188   :  { %954 = vmatpush3.msra.mxu1 %v410_v47 }
 0x189   :  { %958 = vmatprep.subr.mxu1 %v1275_v52 }
 0x23d   :  { %v484_v25 = vpop.f32.mrb[2].mxu1 }
 0x23e   :  { %v558_v26 = vmul.f32 0.17677669, %v484_v25  ;;  %v947_v27 = vpop.f32.mrb[3].mxu1 }
 0x240   :  { %v561_v28 = vsel %vm560_vm1, %v558_v26, -inf }
 0x241   :  { %562 = vmax.xlane.f32.xlu0 %v561_v28  ;;  %v554_v29 = vpop.f32.mrb[4].mxu1 }
 0x242   :  { %v559_v30 = vmul.f32 0.17677669, %v554_v29  ;;  %v952_v31 = vpop.f32.mrb[5].mxu1 }
 0x244   :  { %v564_v32 = vsel %vm560_vm1, %v559_v30, -inf }
 0x245   :  { %565 = vmax.xlane.f32.xlu0 %v564_v32 }
 0x2ce   :  { %v563_v33 = vpop.xlane.xlu0 %562 }
 0x2cf   :  { %v567_v34 = vsub.f32 %v558_v26, %v563_v33 }
 0x2d1   :  { %v569_v35 = vmul.f32 1.442695, %v567_v34 }
 0x2d2   :  { %v566_v36 = vpop.xlane.xlu0 %565 }
 0x2d3   :  { %1071 = vpow2.f32 %v569_v35  ;;  %v568_v37 = vsub.f32 %v559_v30, %v566_v36 }
 0x2d5   :  { %v571_v38 = vmul.f32 1.442695, %v568_v37 }
 0x2d7   :  { %1073 = vpow2.f32 %v571_v38 }
 0x2dd   :  { %v1072_v39 = vpop.eup %1071 }
 0x2de   :  { %v573_v40 = vsel %vm560_vm1, %v1072_v39, 0.0 }
 0x2df   :  { %574 = vadd.xlane.f32.xlu1 %v573_v40 }
 0x2e1   :  { %v1074_v41 = vpop.eup %1073 }
 0x2e2   :  { %v576_v42 = vsel %vm560_vm1, %v1074_v41, 0.0 }
 0x2e3   :  { %577 = vadd.xlane.f32.xlu1 %v576_v42 }
 0x36c   :  { %v575_v48 = vpop.xlane.xlu1 %574 }
 0x36d   :  { %1075 = vrcp.f32 %v575_v48 }
 0x370   :  { %v578_v49 = vpop.xlane.xlu1 %577 }
 0x371   :  { %1077 = vrcp.f32 %v578_v49 }
 0x377   :  { %v1076_v50 = vpop.eup %1075 }
 0x378   :  { %v583_v51 = vmul.f32 %v1076_v50, %v1072_v39 }
 0x37a   :  { %731 = vst.msk [vmem:[#allocation14] sm:$0xff] %vm560_vm1, %v583_v51  ;;  %956 = vmatmul.mubr.msk.f32.vlgmr.msra.gmra.mrb[6].mxu1 %vm560_vm1, %v583_v51 }
 0x37b   :  { %v1078_v53 = vpop.eup %1077  ;;  %959 = vmatpush3.msra.mxu1 %v415_v46  ;;  %960 = vmatprep.mubr.msk.f32.mxu1 %vm1276_vm0, %v1275_v52 }
 0x37c   :  { %v584_v54 = vmul.f32 %v1078_v53, %v1074_v41 }
 0x37e   :  { %732 = vst.msk [vmem:[#allocation14 + $0x8] sm:$0xff] %vm560_vm1, %v584_v54  ;;  %961 = vmatmul.mubr.msk.f32.vlgmr.msra.gmra.mrb[8].mxu1 %vm560_vm1, %v584_v54 }
 0x37f   :  { %1222 = shalt.err (!%p1219_p10)
}
 0x380   :  { %s1223_s16 = scalar_lea.hbm %s1514_s10, 256 }
 0x381   :  { %p1224_p11 = scmp.ne.s32.totalorder %s1514_s10, %s1223_s16  ;;  %p1227_p12 = scmp.lt.u32.totalorder %s1223_s16, %s1514_s10 }
 0x383   :  { %p1229_p13 = pnand %p1227_p12, %p1224_p11 }
 0x385   :  { %1232 = shalt.err (!%p1229_p13)
}
 0x386   :  { %758 = dma.vmem_to_hbm [thread:$0]  %s753_s29, 256, %s1514_s10, [#allocation15], %s1269_s25, %s1269_s25, %s1270_s26  }
 0x387   :  { %s1278_s18 = smov [#allocation13]  }
 0x388   :  { %s740_s1 = sshll.u32 %s1278_s18, 4  ;;  %s741_s1 = int_to_ptr.vmem [resolvable:$true] %s740_s1 }
 0x389   :  { %s1233_s14 = scalar_lea.vmem %s741_s1, 256  ;;  %p1238_p1 = scmp.lt.s32.totalorder %s741_s1, %s741_s1 }
 0x38a   :  { %p1234_p0 = scmp.ne.s32.totalorder %s741_s1, %s1233_s14  ;;  %p1239_p2 = scmp.lt.s32.totalorder %s1233_s14, %s1233_s14 }
 0x38c   :  { %p1240_p3 = por %p1239_p2, %p1238_p1 }
 0x38e   :  { %p1241_p4 = pnand %p1240_p3, %p1234_p0 }
 0x44d   :  { %v654_v52 = vpop.f32.mrb[6].mxu1 }
 0x44e   :  { %733 = vst [vmem:[#allocation13] sm:$0xff] %v654_v52  ;;  %v957_v55 = vpop.f32.mrb[7].mxu1 }
 0x451   :  { %v727_v56 = vpop.f32.mrb[8].mxu1 }
 0x452   :  { %734 = vst [vmem:[#allocation13 + $0x8] sm:$0xff] %v727_v56  ;;  %v962_v57 = vpop.f32.mrb[9].mxu1 }
 0x453   :  { %1244 = shalt.err (!%p1241_p4)
}
 0x454   :  { %s1245_s10 = scalar_lea.hbm %s1513_s9, 256 }
 0x455   :  { %p1246_p5 = scmp.ne.s32.totalorder %s1513_s9, %s1245_s10  ;;  %p1249_p6 = scmp.lt.u32.totalorder %s1245_s10, %s1513_s9 }
 0x457   :  { %p1251_p7 = pnand %p1249_p6, %p1246_p5 }
 0x459   :  { %1254 = shalt.err (!%p1251_p7)
}
 0x45a   :  { %746 = dma.vmem_to_hbm [thread:$0]  %s741_s1, 256, %s1513_s9, [#allocation4], %s1269_s25, %s1269_s25, %s1270_s26  }
 0x45b   :  { %1263 = dma.done.wait [#allocation4], 256  }
 0x45c   :  { %1264 = vsyncadd [#allocation4], 4294967040 }
 0x45d   :  { %1265 = dma.done.wait [#allocation15], 256  }
 0x45e   :  { %1266 = vsyncadd [#allocation15], 4294967040 }
 0x45f   :  { %765 = vsyncpa [#allocation3], 1 }
 0x460   :  { %766 = vsyncpa [#allocation6], 1 }
 0x461   :  { %767 = vsyncpa [#allocation9], 1 }
 0x462   :  { %768 = vsyncpa [#allocation12], 1 }
 0x463   :  { %769 = vsyncpa [#allocation4], 1 }
 0x464   :  { %770 = vsyncpa [#allocation15], 1 }

</bundles_post_ra>
